<compile_context>
chip_gen: v7x
topology: tpu7x:2x2x1
jax: 0.10.0
libtpu: 0.0.40
codegen_flags: <defaults>
</compile_context>

<pallas_src>
import functools

import jax
import jax.numpy as jnp
from jax import lax
from jax.experimental import pallas as pl
from jax.experimental.pallas import tpu as pltpu

# Logical (PyTorch) dims and padded (TPU-friendly) dims.
D_IN, D_HID, D_OUT = 12, 200, 1
D_HID_PAD = 256          # hidden 200 -> 256 (multiple of 128 lanes, fills MXU)
MAX_TILE_B = 2048        # sweepable (512/1024/2048); amortizes grid-step overhead

# dot_general dims: contract h's last dim with w5's last dim -> (1, tile_b).
_TRANS_B_DIMS = (((1,), (1,)), ((), ()))


def _round_up(n, m):
    return ((n + m - 1) // m) * m


def _choose_tile_b(batch, max_tile=MAX_TILE_B):
    """Batch tile: multiple of 128, as large as possible, but keep >= 2 grid
    steps for big batches so v7x megacore can shard the parallel axis."""
    b = _round_up(max(batch, 1), 128)
    if b <= 512:
        return b
    return min(max_tile, _round_up((b + 1) // 2, 128))


def _default_tanh_dtype():
    """bf16 tanh on chips with a bf16 EUP (v6e/v7x); f32 on v5e and older."""
    try:
        kind = jax.devices()[0].device_kind.lower()
    except Exception:
        kind = ""
    if any(t in kind for t in ("v2", "v3", "v4", "v5")):
        return jnp.float32
    return jnp.bfloat16


def hnn_kernel(x_ref, w1_ref, b1_ref, w2_ref, b2_ref, w3_ref, b3_ref,
               w4_ref, b4_ref, w5_ref, o_ref, *, tanh_dtype):
    # x_ref: (tile_b, 12) bf16; wN_ref: bf16; bN_ref: (1, 256) f32;
    # w5_ref: (1, 256) bf16 (real weights in the first 200 lanes);
    # o_ref: (1, tile_b) f32 lane-dense output row.
    def layer(h, w_ref, b_ref):
        acc = jnp.dot(h, w_ref[...], preferred_element_type=jnp.float32)
        # bf16 tanh on v6e/v7x (bf16 EUP path, ~2x rate); f32 on v5e.
        return jnp.tanh((acc + b_ref[...]).astype(tanh_dtype)).astype(jnp.bfloat16)

    h = layer(x_ref[...], w1_ref, b1_ref)        # (tile_b, 256) bf16
    h = layer(h, w2_ref, b2_ref)
    h = layer(h, w3_ref, b3_ref)
    h = layer(h, w4_ref, b4_ref)

    # Layer 5: Linear(200, 1, bias=None). Contract against the single real
    # output column (stored as a (1, 256) row), giving a lane-dense (1, tile_b)
    # result -> unmasked dense store, no 128-lane padded writeback.
    o_ref[...] = lax.dot_general(w5_ref[...], h, _TRANS_B_DIMS,
                                 preferred_element_type=jnp.float32)


def hnn_forward(x, padded_params, *, max_tile_b=MAX_TILE_B, tanh_dtype=None):
    """x: (B, 12) float32 -> (B, 1) float32."""
    if tanh_dtype is None:
        tanh_dtype = _default_tanh_dtype()
    w1, b1, w2, b2, w3, b3, w4, b4, w5 = padded_params

    B = x.shape[0]
    tile_b = _choose_tile_b(B, max_tile_b)
    B_pad = _round_up(B, tile_b)
    num_tiles = B_pad // tile_b

    # Only batch-row padding of the small (B, 12) input; no lane padding.
    x_bf = x.astype(jnp.bfloat16)
    if B_pad != B:
        x_bf = jnp.pad(x_bf, ((0, B_pad - B), (0, 0)))

    const = lambda i: (0, 0)   # weights/biases: VMEM-resident across the grid
    kernel = functools.partial(hnn_kernel, tanh_dtype=tanh_dtype)

    out = pl.pallas_call(
        kernel,
        out_shape=jax.ShapeDtypeStruct((1, B_pad), jnp.float32),
        grid=(num_tiles,),
        in_specs=[
            pl.BlockSpec((tile_b, D_IN), lambda i: (i, 0)),    # x tile
            pl.BlockSpec((D_IN, D_HID_PAD), const),            # w1 (12, 256)
            pl.BlockSpec((1, D_HID_PAD), const),               # b1
            pl.BlockSpec((D_HID_PAD, D_HID_PAD), const),       # w2
            pl.BlockSpec((1, D_HID_PAD), const),               # b2
            pl.BlockSpec((D_HID_PAD, D_HID_PAD), const),       # w3
            pl.BlockSpec((1, D_HID_PAD), const),               # b3
            pl.BlockSpec((D_HID_PAD, D_HID_PAD), const),       # w4
            pl.BlockSpec((1, D_HID_PAD), const),               # b4
            pl.BlockSpec((1, D_HID_PAD), const),               # w5 row
        ],
        out_specs=pl.BlockSpec((1, tile_b), lambda i: (0, i)), # lane-dense row
        compiler_params=pltpu.CompilerParams(
            dimension_semantics=("parallel",),
            vmem_limit_bytes=32 * 1024 * 1024,  # headroom on v7x's 64 MiB VMEM
        ),
    )(x_bf, w1, b1, w2, b2, w3, b3, w4, b4, w5)

    # Slice off batch padding; output column per row.
    return out[0, :B].reshape(B, D_OUT)


def init_params(key):
    """Unpadded f32 parameters matching the PyTorch module shapes.

    Linear weights ~ N(0, 0.1) (as in the reference __init__); biases are
    small random values. Weights are stored (in_features, out_features) so
    the kernel computes x @ W + b (== PyTorch's y @ W_pt.T + b)."""
    dims = [(12, 200), (200, 200), (200, 200), (200, 200), (200, 1)]
    keys = jax.random.split(key, 2 * len(dims))
    params = []
    for i, (din, dout) in enumerate(dims):
        w = 0.1 * jax.random.normal(keys[2 * i], (din, dout), dtype=jnp.float32)
        params.append(w)
        if i < len(dims) - 1:  # last layer has bias=None
            b = 0.01 * jax.random.normal(keys[2 * i + 1], (1, dout),
                                         dtype=jnp.float32)
            params.append(b)
    return tuple(params)


def pad_params(params):
    """Zero-pad hidden dims 200 -> 256; weights -> bf16, biases -> f32.
    w5 (200, 1) is stored as a (1, 256) bf16 row for the lane-dense layer 5."""
    w1, b1, w2, b2, w3, b3, w4, b4, w5 = params

    def pad_w(w, rows, cols):
        out = jnp.zeros((rows, cols), jnp.bfloat16)
        return out.at[:w.shape[0], :w.shape[1]].set(w.astype(jnp.bfloat16))

    def pad_b(b, cols):
        out = jnp.zeros((1, cols), jnp.float32)
        return out.at[:, :b.shape[1]].set(b)

    w5_row = jnp.zeros((1, D_HID_PAD), jnp.bfloat16)
    w5_row = w5_row.at[0, :w5.shape[0]].set(w5[:, 0].astype(jnp.bfloat16))

    return (pad_w(w1, D_IN, D_HID_PAD), pad_b(b1, D_HID_PAD),
            pad_w(w2, D_HID_PAD, D_HID_PAD), pad_b(b2, D_HID_PAD),
            pad_w(w3, D_HID_PAD, D_HID_PAD), pad_b(b3, D_HID_PAD),
            pad_w(w4, D_HID_PAD, D_HID_PAD), pad_b(b4, D_HID_PAD),
            w5_row)


def hnn_reference(x, params, tanh_dtype):
    """Pure-JAX reference emulating the kernel numerics (bf16 matmul operands,
    f32 accumulation, tanh in tanh_dtype) for a tight correctness check."""
    w1, b1, w2, b2, w3, b3, w4, b4, w5 = params

    def bdot(a, w):
        return jnp.dot(a.astype(jnp.bfloat16).astype(jnp.float32),
                       w.astype(jnp.bfloat16).astype(jnp.float32),
                       precision=lax.Precision.HIGHEST)

    def layer(h, w, b):
        return jnp.tanh((bdot(h, w) + b).astype(tanh_dtype)).astype(jnp.float32)

    h = layer(x, w1, b1)
    h = layer(h, w2, b2)
    h = layer(h, w3, b3)
    h = layer(h, w4, b4)
    return bdot(h, w5)


if __name__ == "__main__":
    key = jax.random.PRNGKey(0)
    pkey, xkey = jax.random.split(key)
    params = init_params(pkey)
    padded_params = pad_params(params)

    B = 8
    x = jax.random.normal(xkey, (B, D_IN), dtype=jnp.float32)

    tanh_dtype = _default_tanh_dtype()
    out = hnn_forward(x, padded_params, tanh_dtype=tanh_dtype)
    out = jax.block_until_ready(out)

    ref = hnn_reference(x, params, tanh_dtype)
    assert out.shape == (B, D_OUT), out.shape
    assert jnp.allclose(out, ref, atol=1e-2, rtol=1e-2), (
        "mismatch vs reference", float(jnp.max(jnp.abs(out - ref))))

    print("KERNEL_OK")
</pallas_src>

<mosaic_0001>
module attributes {stable_mosaic.version = 11 : i64} {
  func.func @hnn_kernel(%arg0: i32, %arg1: memref<128x12xbf16, #tpu.memory_space<vmem>>, %arg2: memref<12x256xbf16, #tpu.memory_space<vmem>>, %arg3: memref<1x256xf32, #tpu.memory_space<vmem>>, %arg4: memref<256x256xbf16, #tpu.memory_space<vmem>>, %arg5: memref<1x256xf32, #tpu.memory_space<vmem>>, %arg6: memref<256x256xbf16, #tpu.memory_space<vmem>>, %arg7: memref<1x256xf32, #tpu.memory_space<vmem>>, %arg8: memref<256x256xbf16, #tpu.memory_space<vmem>>, %arg9: memref<1x256xf32, #tpu.memory_space<vmem>>, %arg10: memref<1x256xbf16, #tpu.memory_space<vmem>>, %arg11: memref<1x128xf32, #tpu.memory_space<vmem>>) attributes {dimension_semantics = [#tpu.dimension_semantics<parallel>], iteration_bounds = array<i64: 1>, scalar_prefetch = 0 : i64, scratch_operands = 0 : i64, tpu.core_type = #tpu.core_type<tc>, window_params = [{transform_indices = @transform_0, window_bounds = array<i64: 128, 12>}, {pipeline_mode = #tpu.pipeline_mode<synchronous>, transform_indices = @transform_1, window_bounds = array<i64: 12, 256>}, {pipeline_mode = #tpu.pipeline_mode<synchronous>, transform_indices = @transform_2, window_bounds = array<i64: 1, 256>}, {pipeline_mode = #tpu.pipeline_mode<synchronous>, transform_indices = @transform_3, window_bounds = array<i64: 256, 256>}, {pipeline_mode = #tpu.pipeline_mode<synchronous>, transform_indices = @transform_4, window_bounds = array<i64: 1, 256>}, {pipeline_mode = #tpu.pipeline_mode<synchronous>, transform_indices = @transform_5, window_bounds = array<i64: 256, 256>}, {pipeline_mode = #tpu.pipeline_mode<synchronous>, transform_indices = @transform_6, window_bounds = array<i64: 1, 256>}, {pipeline_mode = #tpu.pipeline_mode<synchronous>, transform_indices = @transform_7, window_bounds = array<i64: 256, 256>}, {pipeline_mode = #tpu.pipeline_mode<synchronous>, transform_indices = @transform_8, window_bounds = array<i64: 1, 256>}, {pipeline_mode = #tpu.pipeline_mode<synchronous>, transform_indices = @transform_9, window_bounds = array<i64: 1, 256>}, {transform_indices = @transform_10, window_bounds = array<i64: 1, 128>}]} {
    %c0 = arith.constant 0 : index
    %c0_0 = arith.constant 0 : index
    %0 = vector.load %arg1[%c0, %c0_0] : memref<128x12xbf16, #tpu.memory_space<vmem>>, vector<128x12xbf16>
    %c0_1 = arith.constant 0 : index
    %c0_2 = arith.constant 0 : index
    %1 = vector.load %arg2[%c0_1, %c0_2] : memref<12x256xbf16, #tpu.memory_space<vmem>>, vector<12x256xbf16>
    %cst = arith.constant dense<0.000000e+00> : vector<128x256xf32>
    %2 = tpu.matmul %0, %1, %cst {dimension_numbers = #tpu.dot_dimension_numbers<[1], [0], [0], [1], [0, 0, 1, 1], [], []>} : vector<128x12xbf16>, vector<12x256xbf16>, vector<128x256xf32> -> vector<128x256xf32>
    %c0_3 = arith.constant 0 : index
    %c0_4 = arith.constant 0 : index
    %3 = vector.load %arg3[%c0_3, %c0_4] : memref<1x256xf32, #tpu.memory_space<vmem>>, vector<1x256xf32>
    %4 = vector.broadcast %3 : vector<1x256xf32> to vector<128x256xf32>
    %5 = arith.addf %2, %4 : vector<128x256xf32>
    %6 = arith.truncf %5 : vector<128x256xf32> to vector<128x256xbf16>
    %7 = math.tanh %6 : vector<128x256xbf16>
    %c0_5 = arith.constant 0 : index
    %c0_6 = arith.constant 0 : index
    %8 = vector.load %arg4[%c0_5, %c0_6] : memref<256x256xbf16, #tpu.memory_space<vmem>>, vector<256x256xbf16>
    %cst_7 = arith.constant dense<0.000000e+00> : vector<128x256xf32>
    %9 = tpu.matmul %7, %8, %cst_7 {dimension_numbers = #tpu.dot_dimension_numbers<[1], [0], [0], [1], [0, 0, 1, 1], [], []>} : vector<128x256xbf16>, vector<256x256xbf16>, vector<128x256xf32> -> vector<128x256xf32>
    %c0_8 = arith.constant 0 : index
    %c0_9 = arith.constant 0 : index
    %10 = vector.load %arg5[%c0_8, %c0_9] : memref<1x256xf32, #tpu.memory_space<vmem>>, vector<1x256xf32>
    %11 = vector.broadcast %10 : vector<1x256xf32> to vector<128x256xf32>
    %12 = arith.addf %9, %11 : vector<128x256xf32>
    %13 = arith.truncf %12 : vector<128x256xf32> to vector<128x256xbf16>
    %14 = math.tanh %13 : vector<128x256xbf16>
    %c0_10 = arith.constant 0 : index
    %c0_11 = arith.constant 0 : index
    %15 = vector.load %arg6[%c0_10, %c0_11] : memref<256x256xbf16, #tpu.memory_space<vmem>>, vector<256x256xbf16>
    %cst_12 = arith.constant dense<0.000000e+00> : vector<128x256xf32>
    %16 = tpu.matmul %14, %15, %cst_12 {dimension_numbers = #tpu.dot_dimension_numbers<[1], [0], [0], [1], [0, 0, 1, 1], [], []>} : vector<128x256xbf16>, vector<256x256xbf16>, vector<128x256xf32> -> vector<128x256xf32>
    %c0_13 = arith.constant 0 : index
    %c0_14 = arith.constant 0 : index
    %17 = vector.load %arg7[%c0_13, %c0_14] : memref<1x256xf32, #tpu.memory_space<vmem>>, vector<1x256xf32>
    %18 = vector.broadcast %17 : vector<1x256xf32> to vector<128x256xf32>
    %19 = arith.addf %16, %18 : vector<128x256xf32>
    %20 = arith.truncf %19 : vector<128x256xf32> to vector<128x256xbf16>
    %21 = math.tanh %20 : vector<128x256xbf16>
    %c0_15 = arith.constant 0 : index
    %c0_16 = arith.constant 0 : index
    %22 = vector.load %arg8[%c0_15, %c0_16] : memref<256x256xbf16, #tpu.memory_space<vmem>>, vector<256x256xbf16>
    %cst_17 = arith.constant dense<0.000000e+00> : vector<128x256xf32>
    %23 = tpu.matmul %21, %22, %cst_17 {dimension_numbers = #tpu.dot_dimension_numbers<[1], [0], [0], [1], [0, 0, 1, 1], [], []>} : vector<128x256xbf16>, vector<256x256xbf16>, vector<128x256xf32> -> vector<128x256xf32>
    %c0_18 = arith.constant 0 : index
    %c0_19 = arith.constant 0 : index
    %24 = vector.load %arg9[%c0_18, %c0_19] : memref<1x256xf32, #tpu.memory_space<vmem>>, vector<1x256xf32>
    %25 = vector.broadcast %24 : vector<1x256xf32> to vector<128x256xf32>
    %26 = arith.addf %23, %25 : vector<128x256xf32>
    %27 = arith.truncf %26 : vector<128x256xf32> to vector<128x256xbf16>
    %28 = math.tanh %27 : vector<128x256xbf16>
    %c0_20 = arith.constant 0 : index
    %c0_21 = arith.constant 0 : index
    %29 = vector.load %arg10[%c0_20, %c0_21] : memref<1x256xbf16, #tpu.memory_space<vmem>>, vector<1x256xbf16>
    %cst_22 = arith.constant dense<0.000000e+00> : vector<1x128xf32>
    %30 = tpu.matmul %29, %28, %cst_22 {dimension_numbers = #tpu.dot_dimension_numbers<[1], [1], [0], [0], [0, 0, 1, 0], [], []>} : vector<1x256xbf16>, vector<128x256xbf16>, vector<1x128xf32> -> vector<1x128xf32>
    %c0_23 = arith.constant 0 : index
    %c0_24 = arith.constant 0 : index
    %31 = vector.load %arg11[%c0_23, %c0_24] : memref<1x128xf32, #tpu.memory_space<vmem>>, vector<1x128xf32>
    tpu.vector_store %arg11[%c0_23, %c0_24], %30 {strides = array<i32>} : memref<1x128xf32, #tpu.memory_space<vmem>>, vector<1x128xf32>,
    return
  }
  func.func @transform_0(%arg0: i32) -> (i32, i32) {
    %c0_i32 = arith.constant 0 : i32
    %c0_i32_0 = arith.constant 0 : i32
    return %arg0, %c0_i32 : i32, i32
  }
  func.func @transform_1(%arg0: i32) -> (i32, i32) {
    %c0_i32 = arith.constant 0 : i32
    %c0_i32_0 = arith.constant 0 : i32
    %c0_i32_1 = arith.constant 0 : i32
    return %c0_i32, %c0_i32_0 : i32, i32
  }
  func.func @transform_2(%arg0: i32) -> (i32, i32) {
    %c0_i32 = arith.constant 0 : i32
    %c0_i32_0 = arith.constant 0 : i32
    %c0_i32_1 = arith.constant 0 : i32
    return %c0_i32, %c0_i32_0 : i32, i32
  }
  func.func @transform_3(%arg0: i32) -> (i32, i32) {
    %c0_i32 = arith.constant 0 : i32
    %c0_i32_0 = arith.constant 0 : i32
    %c0_i32_1 = arith.constant 0 : i32
    return %c0_i32, %c0_i32_0 : i32, i32
  }
  func.func @transform_4(%arg0: i32) -> (i32, i32) {
    %c0_i32 = arith.constant 0 : i32
    %c0_i32_0 = arith.constant 0 : i32
    %c0_i32_1 = arith.constant 0 : i32
    return %c0_i32, %c0_i32_0 : i32, i32
  }
  func.func @transform_5(%arg0: i32) -> (i32, i32) {
    %c0_i32 = arith.constant 0 : i32
    %c0_i32_0 = arith.constant 0 : i32
    %c0_i32_1 = arith.constant 0 : i32
    return %c0_i32, %c0_i32_0 : i32, i32
  }
  func.func @transform_6(%arg0: i32) -> (i32, i32) {
    %c0_i32 = arith.constant 0 : i32
    %c0_i32_0 = arith.constant 0 : i32
    %c0_i32_1 = arith.constant 0 : i32
    return %c0_i32, %c0_i32_0 : i32, i32
  }
  func.func @transform_7(%arg0: i32) -> (i32, i32) {
    %c0_i32 = arith.constant 0 : i32
    %c0_i32_0 = arith.constant 0 : i32
    %c0_i32_1 = arith.constant 0 : i32
    return %c0_i32, %c0_i32_0 : i32, i32
  }
  func.func @transform_8(%arg0: i32) -> (i32, i32) {
    %c0_i32 = arith.constant 0 : i32
    %c0_i32_0 = arith.constant 0 : i32
    %c0_i32_1 = arith.constant 0 : i32
    return %c0_i32, %c0_i32_0 : i32, i32
  }
  func.func @transform_9(%arg0: i32) -> (i32, i32) {
    %c0_i32 = arith.constant 0 : i32
    %c0_i32_0 = arith.constant 0 : i32
    %c0_i32_1 = arith.constant 0 : i32
    return %c0_i32, %c0_i32_0 : i32, i32
  }
  func.func @transform_10(%arg0: i32) -> (i32, i32) {
    %c0_i32 = arith.constant 0 : i32
    %c0_i32_0 = arith.constant 0 : i32
    return %c0_i32, %arg0 : i32, i32
  }
}

</mosaic_0001>

<bundles_post_ra>
// kernel: tpu_custom_call.1
= control target key start
LH: loop header
LB: loop body
LE: loop exit
PB: predicated region body
PF: predicated region fallthrough
CT: control target
= control target key end

     0   :  { %15 = vsyncpa [#allocation3], 0  ;;  %s2325_s0 = inlined_call_operand.vmem [shape: bf16[128,12], index: 0, kind: input, shape index: {}]   ;;  %s2326_s1 = inlined_call_operand.vmem [shape: bf16[12,256], index: 1, kind: input, shape index: {}]   ;;  %s2327_s2 = inlined_call_operand.vmem [shape: f32[1,256], index: 2, kind: input, shape index: {}]   ;;  %s2328_s3 = inlined_call_operand.hbm [shape: bf16[256,256], index: 3, kind: input, shape index: {}]   ;;  %s2329_s4 = inlined_call_operand.vmem [shape: f32[1,256], index: 4, kind: input, shape index: {}]   ;;  %s2330_s5 = inlined_call_operand.hbm [shape: bf16[256,256], index: 5, kind: input, shape index: {}]   ;;  %s2331_s6 = inlined_call_operand.vmem [shape: f32[1,256], index: 6, kind: input, shape index: {}]   ;;  %s2332_s7 = inlined_call_operand.hbm [shape: bf16[256,256], index: 7, kind: input, shape index: {}]   ;;  %s2333_s8 = inlined_call_operand.vmem [shape: f32[1,256], index: 8, kind: input, shape index: {}]   ;;  %s2334_s9 = inlined_call_operand.vmem [shape: bf16[1,256], index: 9, kind: input, shape index: {}]   ;;  %s2335_s10 = inlined_call_operand.hbm [shape: f32[1,128], index: 10, kind: output, shape index: {}]  }
   0x1   :  { %16 = vsyncpa [#allocation6], 0 }
   0x2   :  { %17 = vsyncpa [#allocation4], 0  ;;  %s1964_s13 = smov [#allocation5]   ;;  %s1965_s15 = smov [#allocation2]  }
   0x3   :  { %s43_s14 = sshll.u32 %s1964_s13, 4  ;;  %s29_s16 = sshll.u32 %s1965_s15, 4  ;;  %s44_s14 = int_to_ptr.vmem [resolvable:$true] %s43_s14  ;;  %s2027_s16 = int_to_ptr.vmem [resolvable:$true] %s29_s16 }
   0x4   :  { %s1870_s19 = scalar_lea.hbm %s2330_s5, 4096 }
   0x5   :  { %p1871_p0 = scmp.ne.s32.totalorder %s2330_s5, %s1870_s19  ;;  %p1874_p1 = scmp.lt.u32.totalorder %s1870_s19, %s2330_s5 }
   0x7   :  { %p1876_p2 = pnand %p1874_p1, %p1871_p0 }
   0x9   :  { %1879 = shalt.err (!%p1876_p2)
}
   0xa   :  { %s1880_s24 = scalar_lea.vmem %s44_s14, 4096  ;;  %p1885_p4 = scmp.lt.s32.totalorder %s44_s14, %s44_s14 }
   0xb   :  { %p1881_p3 = scmp.ne.s32.totalorder %s44_s14, %s1880_s24  ;;  %p1886_p5 = scmp.lt.s32.totalorder %s1880_s24, %s1880_s24 }
   0xd   :  { %p1887_p6 = por %p1886_p5, %p1885_p4 }
   0xf   :  { %p1888_p7 = pnand %p1887_p6, %p1881_p3 }
  0x11   :  { %1891 = shalt.err (!%p1888_p7)
}
  0x12   :  { %s1966_s25 = smov 128   ;;  %s1967_s26 = smov 8  }
  0x13   :  { %49 = dma.hbm_to_vmem [thread:$0]  %s2330_s5, 4096, %s44_s14, [#allocation6], %s1966_s25, %s1966_s25, %s1967_s26  }
  0x14   :  { %s1892_s11 = scalar_lea.hbm %s2328_s3, 4096 }
  0x15   :  { %p1893_p8 = scmp.ne.s32.totalorder %s2328_s3, %s1892_s11  ;;  %p1896_p9 = scmp.lt.u32.totalorder %s1892_s11, %s2328_s3 }
  0x17   :  { %p1898_p10 = pnand %p1896_p9, %p1893_p8 }
  0x19   :  { %1901 = shalt.err (!%p1898_p10)
}
  0x1a   :  { %s1902_s18 = scalar_lea.vmem %s2027_s16, 4096  ;;  %p1907_p12 = scmp.lt.s32.totalorder %s2027_s16, %s2027_s16 }
  0x1b   :  { %p1903_p11 = scmp.ne.s32.totalorder %s2027_s16, %s1902_s18  ;;  %p1908_p13 = scmp.lt.s32.totalorder %s1902_s18, %s1902_s18 }
  0x1d   :  { %p1909_p0 = por %p1908_p13, %p1907_p12 }
  0x1f   :  { %p1910_p1 = pnand %p1909_p0, %p1903_p11 }
  0x21   :  { %1913 = shalt.err (!%p1910_p1)
}
  0x22   :  { %35 = dma.hbm_to_vmem [thread:$0]  %s2328_s3, 4096, %s2027_s16, [#allocation3], %s1966_s25, %s1966_s25, %s1967_s26  }
  0x23   :  { %s1968_s19 = smov [#allocation7]   ;;  %s1914_s23 = scalar_lea.hbm %s2332_s7, 4096 }
  0x24   :  { %s57_s20 = sshll.u32 %s1968_s19, 4  ;;  %p1915_p2 = scmp.ne.s32.totalorder %s2332_s7, %s1914_s23  ;;  %s58_s20 = int_to_ptr.vmem [resolvable:$true] %s57_s20 }
  0x25   :  { %p1918_p3 = scmp.lt.u32.totalorder %s1914_s23, %s2332_s7 }
  0x27   :  { %p1920_p4 = pnand %p1918_p3, %p1915_p2 }
  0x29   :  { %1923 = shalt.err (!%p1920_p4)
}
  0x2a   :  { %s1924_s30 = scalar_lea.vmem %s58_s20, 4096  ;;  %p1929_p6 = scmp.lt.s32.totalorder %s58_s20, %s58_s20 }
  0x2b   :  { %p1925_p5 = scmp.ne.s32.totalorder %s58_s20, %s1924_s30  ;;  %p1930_p7 = scmp.lt.s32.totalorder %s1924_s30, %s1924_s30 }
  0x2d   :  { %p1931_p8 = por %p1930_p7, %p1929_p6 }
  0x2f   :  { %p1932_p9 = pnand %p1931_p8, %p1925_p5 }
  0x31   :  { %1935 = shalt.err (!%p1932_p9)
}
  0x32   :  { %63 = dma.hbm_to_vmem [thread:$0]  %s2332_s7, 4096, %s58_s20, [#allocation6], %s1966_s25, %s1966_s25, %s1967_s26  }
  0x33   :  { %1958 = dma.done.wait [#allocation3], 4096  }
  0x34   :  { %1959 = vsyncadd [#allocation3], 4294963200 }
  0x35   :  { %1960 = dma.done.wait [#allocation6], 8192  }
  0x36   :  { %1961 = vsyncadd [#allocation6], 4294959104  ;;  %v1969_v0 = vmov 0   ;;  %vm181_vm0 = vcmask 1045504   ;;  %v1590_v4 = vld [vmem:[%s2325_s0] sm:$0xff]   ;;  %vm156_vm1 = vcmask 97280  }
  0x37   :  { %220 = vmatprep.mubr.bf16.mxu0 %v1969_v0  ;;  %v1587_v1 = vld [vmem:[%s2326_s1 + $0x4] ss:$8 sps:$4 sm:$0x3f]   ;;  %v1589_v2 = vld [vmem:[%s2326_s1] ss:$8 sps:$4 sm:$0x3f]  }
  0x38   :  { %1473 = vmatprep.subr.msk.bf16.mxu0 %vm181_vm0, %v1587_v1  ;;  %v183_v3 = vsel %vm181_vm0, %v1589_v2, 0  ;;  %v1598_v5 = vld [vmem:[#allocation2 + $0x4] ss:$8 sps:$4 sm:$0xff]   ;;  %v1600_v6 = vld [vmem:[#allocation2] ss:$8 sps:$4 sm:$0xff]   ;;  %v1591_v7 = vld [vmem:[%s2325_s0 + $0x8] sm:$0xff]   ;;  %v98_v1 = vlaneseq }
  0x39   :  { %189 = vmatpush1.bf16.msra.mxu0 %v183_v3  ;;  %v1601_v8 = vld [vmem:[#allocation2 + $0x14] ss:$8 sps:$4 sm:$0xff]   ;;  %537 = vmatprep.subr.bf16.mxu1 %v1598_v5  ;;  %v1603_v9 = vld [vmem:[#allocation2 + $0x10] ss:$8 sps:$4 sm:$0xff]   ;;  %v1604_v10 = vld [vmem:[#allocation2 + $0x24] ss:$8 sps:$4 sm:$0xff]  }
  0x3a   :  { %538 = vmatpush1.bf16.msra.mxu1 %v1600_v6  ;;  %v1606_v11 = vld [vmem:[#allocation2 + $0x20] ss:$8 sps:$4 sm:$0xff]   ;;  %v1607_v12 = vld [vmem:[#allocation2 + $0x34] ss:$8 sps:$4 sm:$0xff]   ;;  %v1609_v14 = vld [vmem:[#allocation2 + $0x30] ss:$8 sps:$4 sm:$0xff]  }
  0x3b   :  { %539 = vmatprep.subr.bf16.mxu1 %v1601_v8  ;;  %v1592_v13 = vld [vmem:[%s2325_s0 + $0x10] sm:$0xff]   ;;  %v1613_v17 = vld [vmem:[#allocation2 + $0x54] ss:$8 sps:$4 sm:$0xff]   ;;  %v1593_v18 = vld [vmem:[%s2325_s0 + $0x18] sm:$0xff]   ;;  %v2125_v3 = vshrl.u32 %v98_v1, 7 }
  0x3c   :  { %1474 = vmatmul.mubr.msk.bf16.vlgmr.msra.gmra.mrb[0].mxu0 %vm156_vm1, %v1590_v4  ;;  %v1610_v15 = vld [vmem:[#allocation2 + $0x44] ss:$8 sps:$4 sm:$0xff]   ;;  %v1612_v16 = vld [vmem:[#allocation2 + $0x40] ss:$8 sps:$4 sm:$0xff]   ;;  %v1615_v19 = vld [vmem:[#allocation2 + $0x50] ss:$8 sps:$4 sm:$0xff]  }
  0x3d   :  { %230 = vmatprep.mubr.bf16.mxu0 %v1969_v0  ;;  %v1616_v20 = vld [vmem:[#allocation2 + $0x64] ss:$8 sps:$4 sm:$0xff]   ;;  %v1618_v21 = vld [vmem:[#allocation2 + $0x60] ss:$8 sps:$4 sm:$0xff]   ;;  %v1619_v22 = vld [vmem:[#allocation2 + $0x74] ss:$8 sps:$4 sm:$0xff]  }
  0x3e   :  { %540 = vmatpush1.bf16.msra.mxu1 %v1603_v9  ;;  %v1594_v23 = vld [vmem:[%s2325_s0 + $0x20] sm:$0xff]   ;;  %v1622_v25 = vld [vmem:[#allocation2 + $0x84] ss:$8 sps:$4 sm:$0xff]   ;;  %v1624_v26 = vld [vmem:[#allocation2 + $0x80] ss:$8 sps:$4 sm:$0xff]   ;;  %v2128_v4 = vsub.s32 0, %v2125_v3 }
  0x3f   :  { %541 = vmatprep.subr.bf16.mxu1 %v1604_v10  ;;  %v1621_v24 = vld [vmem:[#allocation2 + $0x70] ss:$8 sps:$4 sm:$0xff]   ;;  %v1625_v27 = vld [vmem:[#allocation2 + $0x94] ss:$8 sps:$4 sm:$0xff]   ;;  %v1628_v30 = vld [vmem:[#allocation2 + $0xa4] ss:$8 sps:$4 sm:$0xff]  }
  0x40   :  { %v1595_v28 = vld [vmem:[%s2325_s0 + $0x28] sm:$0xff]   ;;  %v1630_v31 = vld [vmem:[#allocation2 + $0xa0] ss:$8 sps:$4 sm:$0xff]   ;;  %v1634_v36 = vld [vmem:[#allocation2 + $0xc4] ss:$8 sps:$4 sm:$0xff]   ;;  %v2134_v6 = vsub.s32 1, %v2125_v3 }
  0x41   :  { %v1627_v29 = vld [vmem:[#allocation2 + $0x90] ss:$8 sps:$4 sm:$0xff]   ;;  %v1596_v32 = vld [vmem:[%s2325_s0 + $0x30] sm:$0xff]   ;;  %v1597_v33 = vld [vmem:[%s2325_s0 + $0x38] sm:$0xff]  }
  0x42   :  { %542 = vmatpush1.bf16.msra.mxu1 %v1606_v11  ;;  %v1631_v34 = vld [vmem:[#allocation2 + $0xb4] ss:$8 sps:$4 sm:$0xff]   ;;  %v1633_v35 = vld [vmem:[#allocation2 + $0xb0] ss:$8 sps:$4 sm:$0xff]   ;;  %v1636_v37 = vld [vmem:[#allocation2 + $0xc0] ss:$8 sps:$4 sm:$0xff]  }
  0x43   :  { %543 = vmatprep.subr.bf16.mxu1 %v1607_v12  ;;  %v1637_v38 = vld [vmem:[#allocation2 + $0xd4] ss:$8 sps:$4 sm:$0xff]   ;;  %v1639_v39 = vld [vmem:[#allocation2 + $0xd0] ss:$8 sps:$4 sm:$0xff]   ;;  %v1640_v40 = vld [vmem:[#allocation2 + $0xe4] ss:$8 sps:$4 sm:$0xff]  }
  0x44   :  { %1475 = vmatmul.mubr.msk.bf16.gmra.mrb[4].mxu0 %vm156_vm1, %v1591_v7  ;;  %v1642_v41 = vld [vmem:[#allocation2 + $0xe0] ss:$8 sps:$4 sm:$0xff]   ;;  %v1643_v42 = vld [vmem:[#allocation2 + $0xf4] ss:$8 sps:$4 sm:$0xff]   ;;  %v1645_v43 = vld [vmem:[#allocation2 + $0xf0] ss:$8 sps:$4 sm:$0xff]  }
  0x45   :  { %240 = vmatprep.mubr.bf16.mxu0 %v1969_v0  ;;  %v1646_v44 = vld [vmem:[#allocation5] ss:$8 sps:$4 sm:$0xff]   ;;  %v1648_v45 = vld [vmem:[#allocation5 + $0x4] ss:$8 sps:$4 sm:$0xff]   ;;  %v1651_v46 = vld [vmem:[#allocation5 + $0x14] ss:$8 sps:$4 sm:$0xff]  }
  0x46   :  { %544 = vmatpush1.bf16.msra.mxu1 %v1609_v14  ;;  %886 = vmatprep.subr.bf16.mxu0 %v1648_v45  ;;  %v1649_v47 = vld [vmem:[#allocation5 + $0x10] ss:$8 sps:$4 sm:$0xff]   ;;  %v1654_v48 = vld [vmem:[#allocation5 + $0x24] ss:$8 sps:$4 sm:$0xff]   ;;  %v1652_v49 = vld [vmem:[#allocation5 + $0x20] ss:$8 sps:$4 sm:$0xff]  }
  0x47   :  { %545 = vmatprep.subr.bf16.mxu1 %v1610_v15  ;;  %887 = vmatpush1.bf16.msra.mxu0 %v1646_v44  ;;  %v1657_v50 = vld [vmem:[#allocation5 + $0x34] ss:$8 sps:$4 sm:$0xff]   ;;  %v1655_v51 = vld [vmem:[#allocation5 + $0x30] ss:$8 sps:$4 sm:$0xff]   ;;  %v1660_v52 = vld [vmem:[#allocation5 + $0x44] ss:$8 sps:$4 sm:$0xff]  }
  0x48   :  { %888 = vmatprep.subr.bf16.mxu0 %v1651_v46  ;;  %v1658_v53 = vld [vmem:[#allocation5 + $0x40] ss:$8 sps:$4 sm:$0xff]   ;;  %v1663_v54 = vld [vmem:[#allocation5 + $0x54] ss:$8 sps:$4 sm:$0xff]   ;;  %v1661_v55 = vld [vmem:[#allocation5 + $0x50] ss:$8 sps:$4 sm:$0xff]  }
  0x49   :  { %v1666_v56 = vld [vmem:[#allocation5 + $0x64] ss:$8 sps:$4 sm:$0xff]   ;;  %v1664_v57 = vld [vmem:[#allocation5 + $0x60] ss:$8 sps:$4 sm:$0xff]   ;;  %v1669_v58 = vld [vmem:[#allocation5 + $0x74] ss:$8 sps:$4 sm:$0xff]  }
  0x4a   :  { %546 = vmatpush1.bf16.msra.mxu1 %v1612_v16  ;;  %v1667_v59 = vld [vmem:[#allocation5 + $0x70] ss:$8 sps:$4 sm:$0xff]   ;;  %v1672_v60 = vld [vmem:[#allocation5 + $0x84] ss:$8 sps:$4 sm:$0xff]   ;;  %v1670_v61 = vld [vmem:[#allocation5 + $0x80] ss:$8 sps:$4 sm:$0xff]  }
  0x4b   :  { %547 = vmatprep.subr.bf16.mxu1 %v1613_v17  ;;  %889 = vmatpush1.bf16.msra.mxu0 %v1649_v47  ;;  %v1675_v62 = vld [vmem:[#allocation5 + $0x94] ss:$8 sps:$4 sm:$0xff]   ;;  %v1673_v63 = vld [vmem:[#allocation5 + $0x90] ss:$8 sps:$4 sm:$0xff]   ;;  %v1676_v2 = vld [vmem:[#allocation5 + $0xa0] ss:$8 sps:$4 sm:$0xff]  }
  0x4c   :  { %1476 = vmatmul.mubr.msk.bf16.gmra.mrb[8].mxu0 %vm156_vm1, %v1592_v13  ;;  %890 = vmatprep.subr.bf16.mxu0 %v1654_v48  ;;  %v96_v5 = vld [vmem:[%s2327_s2] sm:$0x3] }
  0x4d   :  { %250 = vmatprep.mubr.bf16.mxu0 %v1969_v0  ;;  %v2137_v7 = vrot.slane %v96_v5, %v2128_v4  ;;  %v2140_v9 = vrot.slane %v96_v5, %v2134_v6 }
  0x4e   :  { %548 = vmatpush1.bf16.msra.mxu1 %v1615_v19 }
  0x4f   :  { %549 = vmatprep.subr.bf16.mxu1 %v1616_v20  ;;  %891 = vmatpush1.bf16.msra.mxu0 %v1652_v49 }
  0x50   :  { %892 = vmatprep.subr.bf16.mxu0 %v1657_v50 }
  0x52   :  { %550 = vmatpush1.bf16.msra.mxu1 %v1618_v21 }
  0x53   :  { %551 = vmatprep.subr.bf16.mxu1 %v1619_v22  ;;  %893 = vmatpush1.bf16.msra.mxu0 %v1655_v51 }
  0x54   :  { %1477 = vmatmul.mubr.msk.bf16.gmra.mrb[12].mxu0 %vm156_vm1, %v1593_v18  ;;  %894 = vmatprep.subr.bf16.mxu0 %v1660_v52 }
  0x55   :  { %260 = vmatprep.mubr.bf16.mxu0 %v1969_v0 }
  0x56   :  { %552 = vmatpush1.bf16.msra.mxu1 %v1621_v24 }
  0x57   :  { %553 = vmatprep.subr.bf16.mxu1 %v1622_v25  ;;  %895 = vmatpush1.bf16.msra.mxu0 %v1658_v53 }
  0x58   :  { %896 = vmatprep.subr.bf16.mxu0 %v1663_v54 }
  0x5a   :  { %554 = vmatpush1.bf16.msra.mxu1 %v1624_v26 }
  0x5b   :  { %555 = vmatprep.subr.bf16.mxu1 %v1625_v27  ;;  %897 = vmatpush1.bf16.msra.mxu0 %v1661_v55 }
  0x5c   :  { %1478 = vmatmul.mubr.msk.bf16.gmra.mrb[16].mxu0 %vm156_vm1, %v1594_v23  ;;  %898 = vmatprep.subr.bf16.mxu0 %v1666_v56 }
  0x5d   :  { %270 = vmatprep.mubr.bf16.mxu0 %v1969_v0 }
  0x5e   :  { %556 = vmatpush1.bf16.msra.mxu1 %v1627_v29 }
  0x5f   :  { %557 = vmatprep.subr.bf16.mxu1 %v1628_v30  ;;  %899 = vmatpush1.bf16.msra.mxu0 %v1664_v57 }
  0x60   :  { %900 = vmatprep.subr.bf16.mxu0 %v1669_v58 }
  0x62   :  { %558 = vmatpush1.bf16.msra.mxu1 %v1630_v31 }
  0x63   :  { %559 = vmatprep.subr.bf16.mxu1 %v1631_v34  ;;  %901 = vmatpush1.bf16.msra.mxu0 %v1667_v59 }
  0x64   :  { %1479 = vmatmul.mubr.msk.bf16.gmra.mrb[20].mxu0 %vm156_vm1, %v1595_v28  ;;  %902 = vmatprep.subr.bf16.mxu0 %v1672_v60 }
  0x65   :  { %280 = vmatprep.mubr.bf16.mxu0 %v1969_v0 }
  0x66   :  { %560 = vmatpush1.bf16.msra.mxu1 %v1633_v35 }
  0x67   :  { %561 = vmatprep.subr.bf16.mxu1 %v1634_v36  ;;  %903 = vmatpush1.bf16.msra.mxu0 %v1670_v61 }
  0x68   :  { %904 = vmatprep.subr.bf16.mxu0 %v1675_v62 }
  0x6a   :  { %562 = vmatpush1.bf16.msra.mxu1 %v1636_v37 }
  0x6b   :  { %563 = vmatprep.subr.bf16.mxu1 %v1637_v38  ;;  %905 = vmatpush1.bf16.msra.mxu0 %v1673_v63 }
  0x6c   :  { %1480 = vmatmul.mubr.msk.bf16.gmra.mrb[24].mxu0 %vm156_vm1, %v1596_v32 }
  0x6d   :  { %290 = vmatprep.mubr.bf16.mxu0 %v1969_v0  ;;  %v1678_v0 = vld [vmem:[#allocation5 + $0xa4] ss:$8 sps:$4 sm:$0xff]  }
  0x6e   :  { %564 = vmatpush1.bf16.msra.mxu1 %v1639_v39  ;;  %906 = vmatprep.subr.bf16.mxu0 %v1678_v0 }
  0x6f   :  { %565 = vmatprep.subr.bf16.mxu1 %v1640_v40  ;;  %907 = vmatpush1.bf16.msra.mxu0 %v1676_v2 }
  0x72   :  { %566 = vmatpush1.bf16.msra.mxu1 %v1642_v41 }
  0x73   :  { %567 = vmatprep.subr.bf16.mxu1 %v1643_v42 }
  0x74   :  { %1481 = vmatmul.mubr.msk.bf16.gmra.mrb[28].mxu0 %vm156_vm1, %v1597_v33 }
  0x76   :  { %568 = vmatpush1.bf16.msra.mxu1 %v1645_v43 }
 0x10f   :  { %v222_v8 = vpop.f32.mrb[0].mxu0 }
 0x110   :  { %v224_v10 = vpop.f32.mrb[1].mxu0  ;;  %v223_v12 = vadd.f32 %v222_v8, %v2137_v7 }
 0x111   :  { %v226_v11 = vpop.f32.mrb[2].mxu0  ;;  %v225_v15 = vadd.f32 %v224_v10, %v2140_v9 }
 0x112   :  { %v227_v13 = vadd.f32 %v226_v11, %v2137_v7  ;;  %v228_v14 = vpop.f32.mrb[3].mxu0 }
 0x113   :  { %v229_v16 = vadd.f32 %v228_v14, %v2140_v9 }
 0x114   :  { %v301_v17 = vpack.c.bf16 %v227_v13, %v223_v12 }
 0x115   :  { %v302_v18 = vpack.c.bf16 %v229_v16, %v225_v15 }
 0x117   :  { %v232_v19 = vpop.f32.mrb[4].mxu0  ;;  %1742 = vtanh.bf16 %v302_v18 }
 0x118   :  { %1744 = vtanh.bf16 %v301_v17  ;;  %v234_v20 = vpop.f32.mrb[5].mxu0  ;;  %v233_v22 = vadd.f32 %v232_v19, %v2137_v7 }
 0x119   :  { %v236_v21 = vpop.f32.mrb[6].mxu0  ;;  %v235_v25 = vadd.f32 %v234_v20, %v2140_v9 }
 0x11a   :  { %v237_v23 = vadd.f32 %v236_v21, %v2137_v7  ;;  %v238_v24 = vpop.f32.mrb[7].mxu0 }
 0x11b   :  { %v239_v26 = vadd.f32 %v238_v24, %v2140_v9 }
 0x11c   :  { %v303_v27 = vpack.c.bf16 %v237_v23, %v233_v22 }
 0x11d   :  { %v304_v28 = vpack.c.bf16 %v239_v26, %v235_v25 }
 0x11f   :  { %1746 = vtanh.bf16 %v304_v28  ;;  %v242_v29 = vpop.f32.mrb[8].mxu0 }
 0x120   :  { %1748 = vtanh.bf16 %v303_v27  ;;  %v244_v30 = vpop.f32.mrb[9].mxu0  ;;  %v243_v33 = vadd.f32 %v242_v29, %v2137_v7 }
 0x121   :  { %v246_v31 = vpop.f32.mrb[10].mxu0  ;;  %v245_v37 = vadd.f32 %v244_v30, %v2140_v9 }
 0x122   :  { %v1743_v32 = vpop.eup %1742  ;;  %v247_v34 = vadd.f32 %v246_v31, %v2137_v7  ;;  %v248_v35 = vpop.f32.mrb[11].mxu0 }
 0x123   :  { %v1745_v36 = vpop.eup %1744  ;;  %v249_v38 = vadd.f32 %v248_v35, %v2140_v9  ;;  %569 = vmatprep.mubr.bf16.mxu1 %v1743_v32 }
 0x124   :  { %v305_v39 = vpack.c.bf16 %v247_v34, %v243_v33  ;;  %570 = vmatmul.mubr.bf16.vlgmr.msra.gmra.mrb[0].mxu1 %v1745_v36 }
 0x125   :  { %v306_v40 = vpack.c.bf16 %v249_v38, %v245_v37 }
 0x127   :  { %1750 = vtanh.bf16 %v306_v40  ;;  %v252_v41 = vpop.f32.mrb[12].mxu0 }
 0x128   :  { %1752 = vtanh.bf16 %v305_v39  ;;  %v254_v42 = vpop.f32.mrb[13].mxu0  ;;  %v253_v45 = vadd.f32 %v252_v41, %v2137_v7 }
 0x129   :  { %v256_v43 = vpop.f32.mrb[14].mxu0  ;;  %v255_v49 = vadd.f32 %v254_v42, %v2140_v9 }
 0x12a   :  { %v1747_v44 = vpop.eup %1746  ;;  %v257_v46 = vadd.f32 %v256_v43, %v2137_v7  ;;  %v258_v47 = vpop.f32.mrb[15].mxu0 }
 0x12b   :  { %v1749_v48 = vpop.eup %1748  ;;  %v259_v50 = vadd.f32 %v258_v47, %v2140_v9  ;;  %579 = vmatprep.mubr.bf16.mxu1 %v1747_v44  ;;  %v1684_v47 = vld [vmem:[#allocation5 + $0xc4] ss:$8 sps:$4 sm:$0xff]  }
 0x12c   :  { %v307_v51 = vpack.c.bf16 %v257_v46, %v253_v45  ;;  %580 = vmatmul.mubr.bf16.gmra.mrb[4].mxu1 %v1749_v48  ;;  %v1679_v46 = vld [vmem:[#allocation5 + $0xb0] ss:$8 sps:$4 sm:$0xff]   ;;  %v1687_v48 = vld [vmem:[#allocation5 + $0xd4] ss:$8 sps:$4 sm:$0xff]  }
 0x12d   :  { %v308_v52 = vpack.c.bf16 %v259_v50, %v255_v49  ;;  %v1685_v49 = vld [vmem:[#allocation5 + $0xd0] ss:$8 sps:$4 sm:$0xff]   ;;  %v1690_v50 = vld [vmem:[#allocation5 + $0xe4] ss:$8 sps:$4 sm:$0xff]  }
 0x12f   :  { %1754 = vtanh.bf16 %v308_v52  ;;  %v262_v53 = vpop.f32.mrb[16].mxu0  ;;  %v1693_v52 = vld [vmem:[#allocation5 + $0xf4] ss:$8 sps:$4 sm:$0xff]  }
 0x130   :  { %1756 = vtanh.bf16 %v307_v51  ;;  %v264_v54 = vpop.f32.mrb[17].mxu0  ;;  %v263_v57 = vadd.f32 %v262_v53, %v2137_v7  ;;  %v1688_v51 = vld [vmem:[#allocation5 + $0xe0] ss:$8 sps:$4 sm:$0xff]   ;;  %v1691_v53 = vld [vmem:[#allocation5 + $0xf0] ss:$8 sps:$4 sm:$0xff]  }
 0x131   :  { %v266_v55 = vpop.f32.mrb[18].mxu0  ;;  %v265_v61 = vadd.f32 %v264_v54, %v2140_v9  ;;  %v1694_v54 = vld [vmem:[#allocation7] ss:$8 sps:$4 sm:$0xff]  }
 0x132   :  { %v1751_v56 = vpop.eup %1750  ;;  %v267_v58 = vadd.f32 %v266_v55, %v2137_v7  ;;  %v268_v59 = vpop.f32.mrb[19].mxu0  ;;  %v1696_v55 = vld [vmem:[#allocation7 + $0x4] ss:$8 sps:$4 sm:$0xff]  }
 0x133   :  { %v1753_v60 = vpop.eup %1752  ;;  %v269_v62 = vadd.f32 %v268_v59, %v2140_v9  ;;  %589 = vmatprep.mubr.bf16.mxu1 %v1751_v56  ;;  %v1699_v56 = vld [vmem:[#allocation7 + $0x14] ss:$8 sps:$4 sm:$0xff]   ;;  %1235 = vmatprep.subr.bf16.mxu1 %v1696_v55  ;;  %v1700_v59 = vld [vmem:[#allocation7 + $0x20] ss:$8 sps:$4 sm:$0xff]  }
 0x134   :  { %v309_v63 = vpack.c.bf16 %v267_v58, %v263_v57  ;;  %590 = vmatmul.mubr.bf16.gmra.mrb[8].mxu1 %v1753_v60  ;;  %v1697_v57 = vld [vmem:[#allocation7 + $0x10] ss:$8 sps:$4 sm:$0xff]   ;;  %v1702_v58 = vld [vmem:[#allocation7 + $0x24] ss:$8 sps:$4 sm:$0xff]   ;;  %v1705_v60 = vld [vmem:[#allocation7 + $0x34] ss:$8 sps:$4 sm:$0xff]  }
 0x135   :  { %v310_v0 = vpack.c.bf16 %v269_v62, %v265_v61  ;;  %1236 = vmatpush1.bf16.msra.mxu1 %v1694_v54  ;;  %v1703_v61 = vld [vmem:[#allocation7 + $0x30] ss:$8 sps:$4 sm:$0xff]   ;;  %v1708_v62 = vld [vmem:[#allocation7 + $0x44] ss:$8 sps:$4 sm:$0xff]  }
 0x136   :  { %1237 = vmatprep.subr.bf16.mxu1 %v1699_v56 }
 0x137   :  { %1758 = vtanh.bf16 %v310_v0  ;;  %v272_v1 = vpop.f32.mrb[20].mxu0  ;;  %v1711_v0 = vld [vmem:[#allocation7 + $0x54] ss:$8 sps:$4 sm:$0xff]  }
 0x138   :  { %1760 = vtanh.bf16 %v309_v63  ;;  %v274_v2 = vpop.f32.mrb[21].mxu0  ;;  %v273_v10 = vadd.f32 %v272_v1, %v2137_v7  ;;  %v1706_v63 = vld [vmem:[#allocation7 + $0x40] ss:$8 sps:$4 sm:$0xff]   ;;  %v1709_v1 = vld [vmem:[#allocation7 + $0x50] ss:$8 sps:$4 sm:$0xff]  }
 0x139   :  { %v276_v5 = vpop.f32.mrb[22].mxu0  ;;  %v275_v14 = vadd.f32 %v274_v2, %v2140_v9  ;;  %1238 = vmatpush1.bf16.msra.mxu1 %v1697_v57  ;;  %v1714_v2 = vld [vmem:[#allocation7 + $0x64] ss:$8 sps:$4 sm:$0xff]  }
 0x13a   :  { %v1755_v8 = vpop.eup %1754  ;;  %v277_v11 = vadd.f32 %v276_v5, %v2137_v7  ;;  %v278_v12 = vpop.f32.mrb[23].mxu0  ;;  %1239 = vmatprep.subr.bf16.mxu1 %v1702_v58  ;;  %v1712_v5 = vld [vmem:[#allocation7 + $0x60] ss:$8 sps:$4 sm:$0xff]  }
 0x13b   :  { %v1757_v13 = vpop.eup %1756  ;;  %v279_v15 = vadd.f32 %v278_v12, %v2140_v9  ;;  %599 = vmatprep.mubr.bf16.mxu1 %v1755_v8  ;;  %v1717_v8 = vld [vmem:[#allocation7 + $0x74] ss:$8 sps:$4 sm:$0xff]   ;;  %v1718_v12 = vld [vmem:[#allocation7 + $0x80] ss:$8 sps:$4 sm:$0xff]  }
 0x13c   :  { %v311_v16 = vpack.c.bf16 %v277_v11, %v273_v10  ;;  %600 = vmatmul.mubr.bf16.gmra.mrb[12].mxu1 %v1757_v13  ;;  %v1715_v10 = vld [vmem:[#allocation7 + $0x70] ss:$8 sps:$4 sm:$0xff]   ;;  %v1720_v11 = vld [vmem:[#allocation7 + $0x84] ss:$8 sps:$4 sm:$0xff]   ;;  %v1723_v13 = vld [vmem:[#allocation7 + $0x94] ss:$8 sps:$4 sm:$0xff]  }
 0x13d   :  { %v312_v17 = vpack.c.bf16 %v279_v15, %v275_v14  ;;  %1240 = vmatpush1.bf16.msra.mxu1 %v1700_v59  ;;  %v1721_v14 = vld [vmem:[#allocation7 + $0x90] ss:$8 sps:$4 sm:$0xff]   ;;  %v1726_v15 = vld [vmem:[#allocation7 + $0xa4] ss:$8 sps:$4 sm:$0xff]  }
 0x13e   :  { %1241 = vmatprep.subr.bf16.mxu1 %v1705_v60 }
 0x13f   :  { %1762 = vtanh.bf16 %v312_v17  ;;  %v282_v18 = vpop.f32.mrb[24].mxu0  ;;  %v365_v17 = vld [vmem:[%s2329_s4] sm:$0x3] }
 0x140   :  { %1764 = vtanh.bf16 %v311_v16  ;;  %v284_v19 = vpop.f32.mrb[25].mxu0  ;;  %v283_v22 = vadd.f32 %v282_v18, %v2137_v7  ;;  %v1724_v16 = vld [vmem:[#allocation7 + $0xa0] ss:$8 sps:$4 sm:$0xff]   ;;  %v2178_v18 = vrot.slane %v365_v17, %v2128_v4 }
 0x141   :  { %v286_v20 = vpop.f32.mrb[26].mxu0  ;;  %v285_v26 = vadd.f32 %v284_v19, %v2140_v9  ;;  %1242 = vmatpush1.bf16.msra.mxu1 %v1703_v61 }
 0x142   :  { %v1759_v21 = vpop.eup %1758  ;;  %v287_v23 = vadd.f32 %v286_v20, %v2137_v7  ;;  %v288_v24 = vpop.f32.mrb[27].mxu0  ;;  %1243 = vmatprep.subr.bf16.mxu1 %v1708_v62  ;;  %v2181_v20 = vrot.slane %v365_v17, %v2134_v6 }
 0x143   :  { %v1761_v25 = vpop.eup %1760  ;;  %v289_v27 = vadd.f32 %v288_v24, %v2140_v9  ;;  %609 = vmatprep.mubr.bf16.mxu1 %v1759_v21 }
 0x144   :  { %v313_v28 = vpack.c.bf16 %v287_v23, %v283_v22  ;;  %610 = vmatmul.mubr.bf16.gmra.mrb[16].mxu1 %v1761_v25 }
 0x145   :  { %v314_v29 = vpack.c.bf16 %v289_v27, %v285_v26  ;;  %1244 = vmatpush1.bf16.msra.mxu1 %v1706_v63 }
 0x146   :  { %1245 = vmatprep.subr.bf16.mxu1 %v1711_v0 }
 0x147   :  { %1766 = vtanh.bf16 %v314_v29  ;;  %v292_v30 = vpop.f32.mrb[28].mxu0 }
 0x148   :  { %1768 = vtanh.bf16 %v313_v28  ;;  %v294_v31 = vpop.f32.mrb[29].mxu0  ;;  %v293_v34 = vadd.f32 %v292_v30, %v2137_v7 }
 0x149   :  { %v296_v32 = vpop.f32.mrb[30].mxu0  ;;  %v295_v38 = vadd.f32 %v294_v31, %v2140_v9  ;;  %1246 = vmatpush1.bf16.msra.mxu1 %v1709_v1 }
 0x14a   :  { %v1763_v33 = vpop.eup %1762  ;;  %v297_v35 = vadd.f32 %v296_v32, %v2137_v7  ;;  %v298_v36 = vpop.f32.mrb[31].mxu0  ;;  %v1681_v7 = vld [vmem:[#allocation5 + $0xb4] ss:$8 sps:$4 sm:$0xff]   ;;  %1247 = vmatprep.subr.bf16.mxu1 %v1714_v2 }
 0x14b   :  { %v1765_v37 = vpop.eup %1764  ;;  %v299_v39 = vadd.f32 %v298_v36, %v2140_v9  ;;  %619 = vmatprep.mubr.bf16.mxu1 %v1763_v33  ;;  %908 = vmatprep.subr.bf16.mxu0 %v1681_v7  ;;  %v1682_v9 = vld [vmem:[#allocation5 + $0xc0] ss:$8 sps:$4 sm:$0xff]  }
 0x14c   :  { %v315_v40 = vpack.c.bf16 %v297_v35, %v293_v34  ;;  %620 = vmatmul.mubr.bf16.gmra.mrb[20].mxu1 %v1765_v37  ;;  %909 = vmatpush1.bf16.msra.mxu0 %v1679_v46 }
 0x14d   :  { %v316_v41 = vpack.c.bf16 %v299_v39, %v295_v38  ;;  %910 = vmatprep.subr.bf16.mxu0 %v1684_v47  ;;  %1248 = vmatpush1.bf16.msra.mxu1 %v1712_v5 }
 0x14e   :  { %1249 = vmatprep.subr.bf16.mxu1 %v1717_v8 }
 0x14f   :  { %1770 = vtanh.bf16 %v316_v41 }
 0x150   :  { %1772 = vtanh.bf16 %v315_v40  ;;  %911 = vmatpush1.bf16.msra.mxu0 %v1682_v9 }
 0x151   :  { %912 = vmatprep.subr.bf16.mxu0 %v1687_v48  ;;  %1250 = vmatpush1.bf16.msra.mxu1 %v1715_v10 }
 0x152   :  { %v1767_v42 = vpop.eup %1766  ;;  %1251 = vmatprep.subr.bf16.mxu1 %v1720_v11 }
 0x153   :  { %v1769_v43 = vpop.eup %1768  ;;  %629 = vmatprep.mubr.bf16.mxu1 %v1767_v42 }
 0x154   :  { %630 = vmatmul.mubr.bf16.gmra.mrb[24].mxu1 %v1769_v43  ;;  %913 = vmatpush1.bf16.msra.mxu0 %v1685_v49 }
 0x155   :  { %914 = vmatprep.subr.bf16.mxu0 %v1690_v50  ;;  %1252 = vmatpush1.bf16.msra.mxu1 %v1718_v12 }
 0x156   :  { %1253 = vmatprep.subr.bf16.mxu1 %v1723_v13 }
 0x158   :  { %915 = vmatpush1.bf16.msra.mxu0 %v1688_v51 }
 0x159   :  { %916 = vmatprep.subr.bf16.mxu0 %v1693_v52  ;;  %1254 = vmatpush1.bf16.msra.mxu1 %v1721_v14 }
 0x15a   :  { %v1771_v44 = vpop.eup %1770  ;;  %1255 = vmatprep.subr.bf16.mxu1 %v1726_v15 }
 0x15b   :  { %v1773_v45 = vpop.eup %1772  ;;  %639 = vmatprep.mubr.bf16.mxu1 %v1771_v44 }
 0x15c   :  { %640 = vmatmul.mubr.bf16.gmra.mrb[28].mxu1 %v1773_v45  ;;  %917 = vmatpush1.bf16.msra.mxu0 %v1691_v53 }
 0x15d   :  { %1256 = vmatpush1.bf16.msra.mxu1 %v1724_v16 }
 0x1f7   :  { %v571_v19 = vpop.f32.mrb[0].mxu1 }
 0x1f8   :  { %v573_v21 = vpop.f32.mrb[1].mxu1  ;;  %v572_v23 = vadd.f32 %v571_v19, %v2178_v18 }
 0x1f9   :  { %v575_v22 = vpop.f32.mrb[2].mxu1  ;;  %v574_v26 = vadd.f32 %v573_v21, %v2181_v20 }
 0x1fa   :  { %v576_v24 = vadd.f32 %v575_v22, %v2178_v18  ;;  %v577_v25 = vpop.f32.mrb[3].mxu1 }
 0x1fb   :  { %v578_v27 = vadd.f32 %v577_v25, %v2181_v20 }
 0x1fc   :  { %v650_v28 = vpack.c.bf16 %v576_v24, %v572_v23 }
 0x1fd   :  { %v651_v29 = vpack.c.bf16 %v578_v27, %v574_v26 }
 0x1ff   :  { %1774 = vtanh.bf16 %v651_v29  ;;  %v581_v30 = vpop.f32.mrb[4].mxu1 }
 0x200   :  { %1776 = vtanh.bf16 %v650_v28  ;;  %v583_v31 = vpop.f32.mrb[5].mxu1  ;;  %v582_v33 = vadd.f32 %v581_v30, %v2178_v18 }
 0x201   :  { %v585_v32 = vpop.f32.mrb[6].mxu1  ;;  %v584_v36 = vadd.f32 %v583_v31, %v2181_v20 }
 0x202   :  { %v586_v34 = vadd.f32 %v585_v32, %v2178_v18  ;;  %v587_v35 = vpop.f32.mrb[7].mxu1 }
 0x203   :  { %v588_v37 = vadd.f32 %v587_v35, %v2181_v20 }
 0x204   :  { %v652_v38 = vpack.c.bf16 %v586_v34, %v582_v33 }
 0x205   :  { %v653_v39 = vpack.c.bf16 %v588_v37, %v584_v36 }
 0x207   :  { %1778 = vtanh.bf16 %v653_v39  ;;  %v591_v40 = vpop.f32.mrb[8].mxu1 }
 0x208   :  { %1780 = vtanh.bf16 %v652_v38  ;;  %v593_v41 = vpop.f32.mrb[9].mxu1  ;;  %v592_v44 = vadd.f32 %v591_v40, %v2178_v18 }
 0x209   :  { %v595_v42 = vpop.f32.mrb[10].mxu1  ;;  %v594_v47 = vadd.f32 %v593_v41, %v2181_v20 }
 0x20a   :  { %v1775_v43 = vpop.eup %1774  ;;  %v596_v45 = vadd.f32 %v595_v42, %v2178_v18  ;;  %v597_v7 = vpop.f32.mrb[11].mxu1 }
 0x20b   :  { %v1777_v46 = vpop.eup %1776  ;;  %v598_v9 = vadd.f32 %v597_v7, %v2181_v20  ;;  %918 = vmatprep.mubr.bf16.mxu0 %v1775_v43 }
 0x20c   :  { %v654_v48 = vpack.c.bf16 %v596_v45, %v592_v44  ;;  %919 = vmatmul.mubr.bf16.vlgmr.msra.gmra.mrb[32].mxu0 %v1777_v46 }
 0x20d   :  { %v655_v49 = vpack.c.bf16 %v598_v9, %v594_v47 }
 0x20f   :  { %1782 = vtanh.bf16 %v655_v49  ;;  %v601_v50 = vpop.f32.mrb[12].mxu1 }
 0x210   :  { %1784 = vtanh.bf16 %v654_v48  ;;  %v603_v51 = vpop.f32.mrb[13].mxu1  ;;  %v602_v54 = vadd.f32 %v601_v50, %v2178_v18 }
 0x211   :  { %v605_v52 = vpop.f32.mrb[14].mxu1  ;;  %v604_v58 = vadd.f32 %v603_v51, %v2181_v20 }
 0x212   :  { %v1779_v53 = vpop.eup %1778  ;;  %v606_v55 = vadd.f32 %v605_v52, %v2178_v18  ;;  %v607_v56 = vpop.f32.mrb[15].mxu1 }
 0x213   :  { %v1781_v57 = vpop.eup %1780  ;;  %v608_v59 = vadd.f32 %v607_v56, %v2181_v20  ;;  %928 = vmatprep.mubr.bf16.mxu0 %v1779_v53  ;;  %v1732_v56 = vld [vmem:[#allocation7 + $0xc4] ss:$8 sps:$4 sm:$0xff]  }
 0x214   :  { %v656_v60 = vpack.c.bf16 %v606_v55, %v602_v54  ;;  %929 = vmatmul.mubr.bf16.gmra.mrb[36].mxu0 %v1781_v57  ;;  %v1727_v55 = vld [vmem:[#allocation7 + $0xb0] ss:$8 sps:$4 sm:$0xff]   ;;  %v1735_v57 = vld [vmem:[#allocation7 + $0xd4] ss:$8 sps:$4 sm:$0xff]  }
 0x215   :  { %v657_v61 = vpack.c.bf16 %v608_v59, %v604_v58  ;;  %v1733_v58 = vld [vmem:[#allocation7 + $0xd0] ss:$8 sps:$4 sm:$0xff]   ;;  %v1738_v59 = vld [vmem:[#allocation7 + $0xe4] ss:$8 sps:$4 sm:$0xff]  }
 0x217   :  { %1786 = vtanh.bf16 %v657_v61  ;;  %v611_v62 = vpop.f32.mrb[16].mxu1  ;;  %v1741_v61 = vld [vmem:[#allocation7 + $0xf4] ss:$8 sps:$4 sm:$0xff]  }
 0x218   :  { %1788 = vtanh.bf16 %v656_v60  ;;  %v613_v63 = vpop.f32.mrb[17].mxu1  ;;  %v612_v2 = vadd.f32 %v611_v62, %v2178_v18  ;;  %v1736_v60 = vld [vmem:[#allocation7 + $0xe0] ss:$8 sps:$4 sm:$0xff]   ;;  %v1739_v62 = vld [vmem:[#allocation7 + $0xf0] ss:$8 sps:$4 sm:$0xff]  }
 0x219   :  { %v615_v0 = vpop.f32.mrb[18].mxu1  ;;  %v614_v11 = vadd.f32 %v613_v63, %v2181_v20  ;;  %v714_v63 = vld [vmem:[%s2331_s6] sm:$0x3] }
 0x21a   :  { %v1783_v1 = vpop.eup %1782  ;;  %v616_v5 = vadd.f32 %v615_v0, %v2178_v18  ;;  %v617_v8 = vpop.f32.mrb[19].mxu1  ;;  %v2219_v0 = vrot.slane %v714_v63, %v2128_v4 }
 0x21b   :  { %v1785_v10 = vpop.eup %1784  ;;  %v618_v12 = vadd.f32 %v617_v8, %v2181_v20  ;;  %938 = vmatprep.mubr.bf16.mxu0 %v1783_v1 }
 0x21c   :  { %v658_v13 = vpack.c.bf16 %v616_v5, %v612_v2  ;;  %939 = vmatmul.mubr.bf16.gmra.mrb[40].mxu0 %v1785_v10  ;;  %v2222_v2 = vrot.slane %v714_v63, %v2134_v6 }
 0x21d   :  { %v659_v14 = vpack.c.bf16 %v618_v12, %v614_v11 }
 0x21f   :  { %1790 = vtanh.bf16 %v659_v14  ;;  %v621_v15 = vpop.f32.mrb[20].mxu1 }
 0x220   :  { %1792 = vtanh.bf16 %v658_v13  ;;  %v623_v16 = vpop.f32.mrb[21].mxu1  ;;  %v622_v21 = vadd.f32 %v621_v15, %v2178_v18 }
 0x221   :  { %v625_v17 = vpop.f32.mrb[22].mxu1  ;;  %v624_v25 = vadd.f32 %v623_v16, %v2181_v20 }
 0x222   :  { %v1787_v19 = vpop.eup %1786  ;;  %v626_v22 = vadd.f32 %v625_v17, %v2178_v18  ;;  %v627_v23 = vpop.f32.mrb[23].mxu1 }
 0x223   :  { %v1789_v24 = vpop.eup %1788  ;;  %v628_v26 = vadd.f32 %v627_v23, %v2181_v20  ;;  %948 = vmatprep.mubr.bf16.mxu0 %v1787_v19 }
 0x224   :  { %v660_v27 = vpack.c.bf16 %v626_v22, %v622_v21  ;;  %949 = vmatmul.mubr.bf16.gmra.mrb[44].mxu0 %v1789_v24 }
 0x225   :  { %v661_v28 = vpack.c.bf16 %v628_v26, %v624_v25 }
 0x227   :  { %1794 = vtanh.bf16 %v661_v28  ;;  %v631_v29 = vpop.f32.mrb[24].mxu1 }
 0x228   :  { %1796 = vtanh.bf16 %v660_v27  ;;  %v633_v30 = vpop.f32.mrb[25].mxu1  ;;  %v632_v33 = vadd.f32 %v631_v29, %v2178_v18 }
 0x229   :  { %v635_v31 = vpop.f32.mrb[26].mxu1  ;;  %v634_v37 = vadd.f32 %v633_v30, %v2181_v20 }
 0x22a   :  { %v1791_v32 = vpop.eup %1790  ;;  %v636_v34 = vadd.f32 %v635_v31, %v2178_v18  ;;  %v637_v35 = vpop.f32.mrb[27].mxu1 }
 0x22b   :  { %v1793_v36 = vpop.eup %1792  ;;  %v638_v38 = vadd.f32 %v637_v35, %v2181_v20  ;;  %958 = vmatprep.mubr.bf16.mxu0 %v1791_v32 }
 0x22c   :  { %v662_v39 = vpack.c.bf16 %v636_v34, %v632_v33  ;;  %959 = vmatmul.mubr.bf16.gmra.mrb[48].mxu0 %v1793_v36 }
 0x22d   :  { %v663_v40 = vpack.c.bf16 %v638_v38, %v634_v37 }
 0x22f   :  { %1798 = vtanh.bf16 %v663_v40  ;;  %v641_v41 = vpop.f32.mrb[28].mxu1 }
 0x230   :  { %1800 = vtanh.bf16 %v662_v39  ;;  %v643_v42 = vpop.f32.mrb[29].mxu1  ;;  %v642_v45 = vadd.f32 %v641_v41, %v2178_v18 }
 0x231   :  { %v645_v43 = vpop.f32.mrb[30].mxu1  ;;  %v644_v9 = vadd.f32 %v643_v42, %v2181_v20 }
 0x232   :  { %v1795_v44 = vpop.eup %1794  ;;  %v646_v7 = vadd.f32 %v645_v43, %v2178_v18  ;;  %v647_v46 = vpop.f32.mrb[31].mxu1  ;;  %v1729_v18 = vld [vmem:[#allocation7 + $0xb4] ss:$8 sps:$4 sm:$0xff]  }
 0x233   :  { %v1797_v47 = vpop.eup %1796  ;;  %v648_v48 = vadd.f32 %v647_v46, %v2181_v20  ;;  %968 = vmatprep.mubr.bf16.mxu0 %v1795_v44  ;;  %1257 = vmatprep.subr.bf16.mxu1 %v1729_v18  ;;  %v1730_v20 = vld [vmem:[#allocation7 + $0xc0] ss:$8 sps:$4 sm:$0xff]  }
 0x234   :  { %v664_v49 = vpack.c.bf16 %v646_v7, %v642_v45  ;;  %969 = vmatmul.mubr.bf16.gmra.mrb[52].mxu0 %v1797_v47  ;;  %1258 = vmatpush1.bf16.msra.mxu1 %v1727_v55 }
 0x235   :  { %v665_v50 = vpack.c.bf16 %v648_v48, %v644_v9  ;;  %1259 = vmatprep.subr.bf16.mxu1 %v1732_v56 }
 0x237   :  { %1802 = vtanh.bf16 %v665_v50 }
 0x238   :  { %1804 = vtanh.bf16 %v664_v49  ;;  %1260 = vmatpush1.bf16.msra.mxu1 %v1730_v20 }
 0x239   :  { %1261 = vmatprep.subr.bf16.mxu1 %v1735_v57 }
 0x23a   :  { %v1799_v51 = vpop.eup %1798 }
 0x23b   :  { %v1801_v52 = vpop.eup %1800  ;;  %978 = vmatprep.mubr.bf16.mxu0 %v1799_v51 }
 0x23c   :  { %979 = vmatmul.mubr.bf16.gmra.mrb[56].mxu0 %v1801_v52  ;;  %1262 = vmatpush1.bf16.msra.mxu1 %v1733_v58 }
 0x23d   :  { %1263 = vmatprep.subr.bf16.mxu1 %v1738_v59 }
 0x240   :  { %1264 = vmatpush1.bf16.msra.mxu1 %v1736_v60 }
 0x241   :  { %1265 = vmatprep.subr.bf16.mxu1 %v1741_v61 }
 0x242   :  { %v1803_v53 = vpop.eup %1802 }
 0x243   :  { %v1805_v54 = vpop.eup %1804  ;;  %988 = vmatprep.mubr.bf16.mxu0 %v1803_v53 }
 0x244   :  { %989 = vmatmul.mubr.bf16.gmra.mrb[60].mxu0 %v1805_v54  ;;  %1266 = vmatpush1.bf16.msra.mxu1 %v1739_v62 }
 0x2df   :  { %v920_v1 = vpop.f32.mrb[32].mxu0 }
 0x2e0   :  { %v922_v5 = vpop.f32.mrb[33].mxu0  ;;  %v921_v10 = vadd.f32 %v920_v1, %v2219_v0 }
 0x2e1   :  { %v924_v8 = vpop.f32.mrb[34].mxu0  ;;  %v923_v13 = vadd.f32 %v922_v5, %v2222_v2 }
 0x2e2   :  { %v925_v11 = vadd.f32 %v924_v8, %v2219_v0  ;;  %v926_v12 = vpop.f32.mrb[35].mxu0 }
 0x2e3   :  { %v927_v14 = vadd.f32 %v926_v12, %v2222_v2 }
 0x2e4   :  { %v999_v15 = vpack.c.bf16 %v925_v11, %v921_v10 }
 0x2e5   :  { %v1000_v16 = vpack.c.bf16 %v927_v14, %v923_v13 }
 0x2e7   :  { %1806 = vtanh.bf16 %v1000_v16  ;;  %v930_v17 = vpop.f32.mrb[36].mxu0 }
 0x2e8   :  { %1808 = vtanh.bf16 %v999_v15  ;;  %v932_v19 = vpop.f32.mrb[37].mxu0  ;;  %v931_v22 = vadd.f32 %v930_v17, %v2219_v0 }
 0x2e9   :  { %v934_v21 = vpop.f32.mrb[38].mxu0  ;;  %v933_v25 = vadd.f32 %v932_v19, %v2222_v2 }
 0x2ea   :  { %v935_v23 = vadd.f32 %v934_v21, %v2219_v0  ;;  %v936_v24 = vpop.f32.mrb[39].mxu0 }
 0x2eb   :  { %v937_v26 = vadd.f32 %v936_v24, %v2222_v2 }
 0x2ec   :  { %v1001_v27 = vpack.c.bf16 %v935_v23, %v931_v22 }
 0x2ed   :  { %v1002_v28 = vpack.c.bf16 %v937_v26, %v933_v25 }
 0x2ef   :  { %1810 = vtanh.bf16 %v1002_v28  ;;  %v940_v29 = vpop.f32.mrb[40].mxu0 }
 0x2f0   :  { %1812 = vtanh.bf16 %v1001_v27  ;;  %v942_v30 = vpop.f32.mrb[41].mxu0  ;;  %v941_v33 = vadd.f32 %v940_v29, %v2219_v0 }
 0x2f1   :  { %v944_v31 = vpop.f32.mrb[42].mxu0  ;;  %v943_v37 = vadd.f32 %v942_v30, %v2222_v2 }
 0x2f2   :  { %v1807_v32 = vpop.eup %1806  ;;  %v945_v34 = vadd.f32 %v944_v31, %v2219_v0  ;;  %v946_v35 = vpop.f32.mrb[43].mxu0 }
 0x2f3   :  { %v1809_v36 = vpop.eup %1808  ;;  %v947_v38 = vadd.f32 %v946_v35, %v2222_v2  ;;  %1267 = vmatprep.mubr.bf16.mxu1 %v1807_v32 }
 0x2f4   :  { %v1003_v39 = vpack.c.bf16 %v945_v34, %v941_v33  ;;  %1268 = vmatmul.mubr.bf16.vlgmr.msra.gmra.mrb[32].mxu1 %v1809_v36 }
 0x2f5   :  { %v1004_v40 = vpack.c.bf16 %v947_v38, %v943_v37 }
 0x2f7   :  { %1814 = vtanh.bf16 %v1004_v40  ;;  %v950_v41 = vpop.f32.mrb[44].mxu0 }
 0x2f8   :  { %1816 = vtanh.bf16 %v1003_v39  ;;  %v952_v42 = vpop.f32.mrb[45].mxu0  ;;  %v951_v45 = vadd.f32 %v950_v41, %v2219_v0 }
 0x2f9   :  { %v954_v43 = vpop.f32.mrb[46].mxu0  ;;  %v953_v9 = vadd.f32 %v952_v42, %v2222_v2 }
 0x2fa   :  { %v1811_v44 = vpop.eup %1810  ;;  %v955_v7 = vadd.f32 %v954_v43, %v2219_v0  ;;  %v956_v46 = vpop.f32.mrb[47].mxu0 }
 0x2fb   :  { %v1813_v47 = vpop.eup %1812  ;;  %v957_v48 = vadd.f32 %v956_v46, %v2222_v2  ;;  %1277 = vmatprep.mubr.bf16.mxu1 %v1811_v44 }
 0x2fc   :  { %v1005_v49 = vpack.c.bf16 %v955_v7, %v951_v45  ;;  %1278 = vmatmul.mubr.bf16.gmra.mrb[36].mxu1 %v1813_v47 }
 0x2fd   :  { %v1006_v50 = vpack.c.bf16 %v957_v48, %v953_v9 }
 0x2ff   :  { %1818 = vtanh.bf16 %v1006_v50  ;;  %v960_v51 = vpop.f32.mrb[48].mxu0  ;;  %v1063_v50 = vld [vmem:[%s2333_s8] sm:$0x3]  ;;  %s1971_s8 = smov [#allocation8]  }
 0x300   :  { %1820 = vtanh.bf16 %v1005_v49  ;;  %v962_v52 = vpop.f32.mrb[49].mxu0  ;;  %v961_v18 = vadd.f32 %v960_v51, %v2219_v0  ;;  %v2273_v51 = vrot.slane %v1063_v50, %v2128_v4 }
 0x301   :  { %v964_v53 = vpop.f32.mrb[50].mxu0  ;;  %v963_v57 = vadd.f32 %v962_v52, %v2222_v2 }
 0x302   :  { %v1815_v54 = vpop.eup %1814  ;;  %v965_v55 = vadd.f32 %v964_v53, %v2219_v0  ;;  %v966_v56 = vpop.f32.mrb[51].mxu0  ;;  %v2276_v53 = vrot.slane %v1063_v50, %v2134_v6 }
 0x303   :  { %v1817_v20 = vpop.eup %1816  ;;  %v967_v58 = vadd.f32 %v966_v56, %v2222_v2  ;;  %1287 = vmatprep.mubr.bf16.mxu1 %v1815_v54 }
 0x304   :  { %v1007_v59 = vpack.c.bf16 %v965_v55, %v961_v18  ;;  %1288 = vmatmul.mubr.bf16.gmra.mrb[40].mxu1 %v1817_v20 }
 0x305   :  { %v1008_v60 = vpack.c.bf16 %v967_v58, %v963_v57 }
 0x307   :  { %1822 = vtanh.bf16 %v1008_v60  ;;  %v970_v61 = vpop.f32.mrb[52].mxu0 }
 0x308   :  { %1824 = vtanh.bf16 %v1007_v59  ;;  %v972_v62 = vpop.f32.mrb[53].mxu0  ;;  %v971_v5 = vadd.f32 %v970_v61, %v2219_v0 }
 0x309   :  { %v974_v63 = vpop.f32.mrb[54].mxu0  ;;  %v973_v12 = vadd.f32 %v972_v62, %v2222_v2 }
 0x30a   :  { %v1819_v1 = vpop.eup %1818  ;;  %v975_v8 = vadd.f32 %v974_v63, %v2219_v0  ;;  %v976_v10 = vpop.f32.mrb[55].mxu0 }
 0x30b   :  { %v1821_v11 = vpop.eup %1820  ;;  %v977_v13 = vadd.f32 %v976_v10, %v2222_v2  ;;  %1297 = vmatprep.mubr.bf16.mxu1 %v1819_v1 }
 0x30c   :  { %v1009_v14 = vpack.c.bf16 %v975_v8, %v971_v5  ;;  %1298 = vmatmul.mubr.bf16.gmra.mrb[44].mxu1 %v1821_v11 }
 0x30d   :  { %v1010_v15 = vpack.c.bf16 %v977_v13, %v973_v12 }
 0x30f   :  { %1826 = vtanh.bf16 %v1010_v15  ;;  %v980_v16 = vpop.f32.mrb[56].mxu0 }
 0x310   :  { %1828 = vtanh.bf16 %v1009_v14  ;;  %v982_v17 = vpop.f32.mrb[57].mxu0  ;;  %v981_v22 = vadd.f32 %v980_v16, %v2219_v0 }
 0x311   :  { %v984_v19 = vpop.f32.mrb[58].mxu0  ;;  %v983_v26 = vadd.f32 %v982_v17, %v2222_v2 }
 0x312   :  { %v1823_v21 = vpop.eup %1822  ;;  %v985_v23 = vadd.f32 %v984_v19, %v2219_v0  ;;  %v986_v24 = vpop.f32.mrb[59].mxu0 }
 0x313   :  { %v1825_v25 = vpop.eup %1824  ;;  %v987_v27 = vadd.f32 %v986_v24, %v2222_v2  ;;  %1307 = vmatprep.mubr.bf16.mxu1 %v1823_v21 }
 0x314   :  { %v1011_v28 = vpack.c.bf16 %v985_v23, %v981_v22  ;;  %1308 = vmatmul.mubr.bf16.gmra.mrb[48].mxu1 %v1825_v25 }
 0x315   :  { %v1012_v29 = vpack.c.bf16 %v987_v27, %v983_v26 }
 0x317   :  { %1830 = vtanh.bf16 %v1012_v29  ;;  %v990_v30 = vpop.f32.mrb[60].mxu0 }
 0x318   :  { %1832 = vtanh.bf16 %v1011_v28  ;;  %v992_v31 = vpop.f32.mrb[61].mxu0  ;;  %v991_v34 = vadd.f32 %v990_v30, %v2219_v0 }
 0x319   :  { %v994_v32 = vpop.f32.mrb[62].mxu0  ;;  %v993_v38 = vadd.f32 %v992_v31, %v2222_v2 }
 0x31a   :  { %v1827_v33 = vpop.eup %1826  ;;  %v995_v35 = vadd.f32 %v994_v32, %v2219_v0  ;;  %v996_v36 = vpop.f32.mrb[63].mxu0  ;;  %v1970_v0 = vmov 1966171168  }
 0x31b   :  { %v1829_v37 = vpop.eup %1828  ;;  %v997_v39 = vadd.f32 %v996_v36, %v2222_v2  ;;  %1317 = vmatprep.mubr.bf16.mxu1 %v1827_v33  ;;  %v1391_v7 = vunpack.c.l.s4 %v1970_v0  ;;  %v2259_v2 = vld.sshfl [vmem:[%s2334_s9] sm:$0x11 pattern:$0x75316420]  ;;  %s1453_s9 = sshll.u32 %s1971_s8, 4  ;;  %s1454_s9 = int_to_ptr.vmem [resolvable:$true] %s1453_s9 }
 0x31c   :  { %v1013_v40 = vpack.c.bf16 %v995_v35, %v991_v34  ;;  %1318 = vmatmul.mubr.bf16.gmra.mrb[52].mxu1 %v1829_v37  ;;  %v1389_v47 = vcombine.high %v2259_v2, %v2259_v2  ;;  %s1936_s13 = scalar_lea.vmem %s1454_s9, 16  ;;  %s1940_s15 = scalar_lea.vmem %s1454_s9, 32 }
 0x31d   :  { %v1014_v41 = vpack.c.bf16 %v997_v39, %v993_v38  ;;  %v1392_v46 = vunpack.c.0.s8 %v1391_v7  ;;  %p1937_p10 = scmp.ne.s32.totalorder %s1454_s9, %s1936_s13  ;;  %p1941_p11 = scmp.lt.s32.totalorder %s1454_s9, %s1454_s9 }
 0x31e   :  { %p1942_p12 = scmp.lt.s32.totalorder %s1940_s15, %s1936_s13 }
 0x31f   :  { %1834 = vtanh.bf16 %v1014_v41  ;;  %v2264_v9 = vsub.s32 %v1392_v46, %v2125_v3 }
 0x320   :  { %1836 = vtanh.bf16 %v1013_v40  ;;  %p1943_p13 = por %p1942_p12, %p1941_p11 }
 0x321   :  { %v1396_v48 = vrot.slane %v2259_v2, %v2264_v9  ;;  %v1403_v49 = vrot.slane %v1389_v47, %v2264_v9 }
 0x322   :  { %v1831_v42 = vpop.eup %1830  ;;  %p1944_p0 = pnand %p1943_p13, %p1937_p10 }
 0x323   :  { %v1833_v43 = vpop.eup %1832  ;;  %1327 = vmatprep.mubr.bf16.mxu1 %v1831_v42  ;;  %1438 = vmatprep.mubr.bf16.mxu0 %v1403_v49 }
 0x324   :  { %1328 = vmatmul.mubr.bf16.gmra.mrb[56].mxu1 %v1833_v43 }
 0x32a   :  { %v1835_v44 = vpop.eup %1834 }
 0x32b   :  { %v1837_v45 = vpop.eup %1836  ;;  %1337 = vmatprep.mubr.bf16.mxu1 %v1835_v44 }
 0x32c   :  { %1338 = vmatmul.mubr.bf16.gmra.mrb[60].mxu1 %v1837_v45 }
 0x3c7   :  { %v1269_v52 = vpop.f32.mrb[32].mxu1 }
 0x3c8   :  { %v1271_v54 = vpop.f32.mrb[33].mxu1  ;;  %v1270_v18 = vadd.f32 %v1269_v52, %v2273_v51 }
 0x3c9   :  { %v1273_v3 = vpop.f32.mrb[34].mxu1  ;;  %v1272_v20 = vadd.f32 %v1271_v54, %v2276_v53 }
 0x3ca   :  { %v1274_v55 = vadd.f32 %v1273_v3, %v2273_v51  ;;  %v1275_v56 = vpop.f32.mrb[35].mxu1 }
 0x3cb   :  { %v1276_v57 = vadd.f32 %v1275_v56, %v2276_v53 }
 0x3cc   :  { %v1348_v58 = vpack.c.bf16 %v1274_v55, %v1270_v18 }
 0x3cd   :  { %v1349_v59 = vpack.c.bf16 %v1276_v57, %v1272_v20 }
 0x3cf   :  { %1838 = vtanh.bf16 %v1349_v59  ;;  %v1279_v4 = vpop.f32.mrb[36].mxu1 }
 0x3d0   :  { %1840 = vtanh.bf16 %v1348_v58  ;;  %v1281_v60 = vpop.f32.mrb[37].mxu1  ;;  %v1280_v6 = vadd.f32 %v1279_v4, %v2273_v51 }
 0x3d1   :  { %v1283_v61 = vpop.f32.mrb[38].mxu1  ;;  %v1282_v1 = vadd.f32 %v1281_v60, %v2276_v53 }
 0x3d2   :  { %v1284_v62 = vadd.f32 %v1283_v61, %v2273_v51  ;;  %v1285_v63 = vpop.f32.mrb[39].mxu1 }
 0x3d3   :  { %v1286_v5 = vadd.f32 %v1285_v63, %v2276_v53 }
 0x3d4   :  { %v1350_v8 = vpack.c.bf16 %v1284_v62, %v1280_v6 }
 0x3d5   :  { %v1351_v10 = vpack.c.bf16 %v1286_v5, %v1282_v1 }
 0x3d7   :  { %1842 = vtanh.bf16 %v1351_v10  ;;  %v1289_v11 = vpop.f32.mrb[40].mxu1 }
 0x3d8   :  { %1844 = vtanh.bf16 %v1350_v8  ;;  %v1291_v12 = vpop.f32.mrb[41].mxu1  ;;  %v1290_v15 = vadd.f32 %v1289_v11, %v2273_v51 }
 0x3d9   :  { %v1293_v13 = vpop.f32.mrb[42].mxu1  ;;  %v1292_v21 = vadd.f32 %v1291_v12, %v2276_v53 }
 0x3da   :  { %v1839_v14 = vpop.eup %1838  ;;  %v1294_v16 = vadd.f32 %v1293_v13, %v2273_v51  ;;  %v1295_v17 = vpop.f32.mrb[43].mxu1 }
 0x3db   :  { %v1841_v19 = vpop.eup %1840  ;;  %v1296_v22 = vadd.f32 %v1295_v17, %v2276_v53  ;;  %1406 = vmatprep.subr.bf16.mxu0 %v1839_v14 }
 0x3dc   :  { %v1352_v23 = vpack.c.bf16 %v1294_v16, %v1290_v15  ;;  %1407 = vmatpush1.bf16.xpose.msra.mxu0 %v1841_v19 }
 0x3dd   :  { %v1353_v24 = vpack.c.bf16 %v1296_v22, %v1292_v21 }
 0x3df   :  { %1846 = vtanh.bf16 %v1353_v24  ;;  %v1299_v25 = vpop.f32.mrb[44].mxu1 }
 0x3e0   :  { %1848 = vtanh.bf16 %v1352_v23  ;;  %v1301_v26 = vpop.f32.mrb[45].mxu1  ;;  %v1300_v29 = vadd.f32 %v1299_v25, %v2273_v51 }
 0x3e1   :  { %v1303_v27 = vpop.f32.mrb[46].mxu1  ;;  %v1302_v33 = vadd.f32 %v1301_v26, %v2276_v53 }
 0x3e2   :  { %v1843_v28 = vpop.eup %1842  ;;  %v1304_v30 = vadd.f32 %v1303_v27, %v2273_v51  ;;  %v1305_v31 = vpop.f32.mrb[47].mxu1 }
 0x3e3   :  { %v1845_v32 = vpop.eup %1844  ;;  %v1306_v34 = vadd.f32 %v1305_v31, %v2276_v53  ;;  %1408 = vmatprep.subr.bf16.mxu0 %v1843_v28 }
 0x3e4   :  { %v1354_v35 = vpack.c.bf16 %v1304_v30, %v1300_v29  ;;  %1409 = vmatpush1.bf16.xpose.msra.mxu0 %v1845_v32 }
 0x3e5   :  { %v1355_v36 = vpack.c.bf16 %v1306_v34, %v1302_v33 }
 0x3e7   :  { %1850 = vtanh.bf16 %v1355_v36  ;;  %v1309_v37 = vpop.f32.mrb[48].mxu1 }
 0x3e8   :  { %1852 = vtanh.bf16 %v1354_v35  ;;  %v1311_v38 = vpop.f32.mrb[49].mxu1  ;;  %v1310_v41 = vadd.f32 %v1309_v37, %v2273_v51 }
 0x3e9   :  { %v1313_v39 = vpop.f32.mrb[50].mxu1  ;;  %v1312_v45 = vadd.f32 %v1311_v38, %v2276_v53 }
 0x3ea   :  { %v1847_v40 = vpop.eup %1846  ;;  %v1314_v42 = vadd.f32 %v1313_v39, %v2273_v51  ;;  %v1315_v43 = vpop.f32.mrb[51].mxu1 }
 0x3eb   :  { %v1849_v44 = vpop.eup %1848  ;;  %v1316_v0 = vadd.f32 %v1315_v43, %v2276_v53  ;;  %1410 = vmatprep.subr.bf16.mxu0 %v1847_v40 }
 0x3ec   :  { %v1356_v7 = vpack.c.bf16 %v1314_v42, %v1310_v41  ;;  %1411 = vmatpush1.bf16.xpose.msra.mxu0 %v1849_v44 }
 0x3ed   :  { %v1357_v46 = vpack.c.bf16 %v1316_v0, %v1312_v45 }
 0x3ef   :  { %1854 = vtanh.bf16 %v1357_v46  ;;  %v1319_v47 = vpop.f32.mrb[52].mxu1 }
 0x3f0   :  { %1856 = vtanh.bf16 %v1356_v7  ;;  %v1321_v49 = vpop.f32.mrb[53].mxu1  ;;  %v1320_v54 = vadd.f32 %v1319_v47, %v2273_v51 }
 0x3f1   :  { %v1323_v50 = vpop.f32.mrb[54].mxu1  ;;  %v1322_v56 = vadd.f32 %v1321_v49, %v2276_v53 }
 0x3f2   :  { %v1851_v52 = vpop.eup %1850  ;;  %v1324_v3 = vadd.f32 %v1323_v50, %v2273_v51  ;;  %v1325_v18 = vpop.f32.mrb[55].mxu1 }
 0x3f3   :  { %v1853_v55 = vpop.eup %1852  ;;  %v1326_v20 = vadd.f32 %v1325_v18, %v2276_v53  ;;  %1412 = vmatprep.subr.bf16.mxu0 %v1851_v52 }
 0x3f4   :  { %v1358_v57 = vpack.c.bf16 %v1324_v3, %v1320_v54  ;;  %1413 = vmatpush1.bf16.xpose.msra.mxu0 %v1853_v55 }
 0x3f5   :  { %v1359_v58 = vpack.c.bf16 %v1326_v20, %v1322_v56 }
 0x3f7   :  { %1858 = vtanh.bf16 %v1359_v58  ;;  %v1329_v59 = vpop.f32.mrb[56].mxu1 }
 0x3f8   :  { %1860 = vtanh.bf16 %v1358_v57  ;;  %v1331_v4 = vpop.f32.mrb[57].mxu1  ;;  %v1330_v6 = vadd.f32 %v1329_v59, %v2273_v51 }
 0x3f9   :  { %v1333_v60 = vpop.f32.mrb[58].mxu1  ;;  %v1332_v5 = vadd.f32 %v1331_v4, %v2276_v53 }
 0x3fa   :  { %v1855_v61 = vpop.eup %1854  ;;  %v1334_v62 = vadd.f32 %v1333_v60, %v2273_v51  ;;  %v1335_v63 = vpop.f32.mrb[59].mxu1 }
 0x3fb   :  { %v1857_v1 = vpop.eup %1856  ;;  %v1336_v8 = vadd.f32 %v1335_v63, %v2276_v53  ;;  %1414 = vmatprep.subr.bf16.mxu0 %v1855_v61 }
 0x3fc   :  { %v1360_v10 = vpack.c.bf16 %v1334_v62, %v1330_v6  ;;  %1415 = vmatpush1.bf16.xpose.msra.mxu0 %v1857_v1 }
 0x3fd   :  { %v1361_v11 = vpack.c.bf16 %v1336_v8, %v1332_v5 }
 0x3ff   :  { %1862 = vtanh.bf16 %v1361_v11  ;;  %v1339_v12 = vpop.f32.mrb[60].mxu1 }
 0x400   :  { %1864 = vtanh.bf16 %v1360_v10  ;;  %v1341_v13 = vpop.f32.mrb[61].mxu1  ;;  %v1340_v16 = vadd.f32 %v1339_v12, %v2273_v51 }
 0x401   :  { %v1343_v14 = vpop.f32.mrb[62].mxu1  ;;  %v1342_v22 = vadd.f32 %v1341_v13, %v2276_v53 }
 0x402   :  { %v1859_v15 = vpop.eup %1858  ;;  %v1344_v17 = vadd.f32 %v1343_v14, %v2273_v51  ;;  %v1345_v19 = vpop.f32.mrb[63].mxu1 }
 0x403   :  { %v1861_v21 = vpop.eup %1860  ;;  %v1346_v23 = vadd.f32 %v1345_v19, %v2276_v53  ;;  %1416 = vmatprep.subr.bf16.mxu0 %v1859_v15 }
 0x404   :  { %v1362_v24 = vpack.c.bf16 %v1344_v17, %v1340_v16  ;;  %1417 = vmatpush1.bf16.xpose.msra.mxu0 %v1861_v21 }
 0x405   :  { %v1363_v25 = vpack.c.bf16 %v1346_v23, %v1342_v22 }
 0x407   :  { %1866 = vtanh.bf16 %v1363_v25 }
 0x408   :  { %1868 = vtanh.bf16 %v1362_v24 }
 0x40a   :  { %v1863_v26 = vpop.eup %1862 }
 0x40b   :  { %v1865_v27 = vpop.eup %1864  ;;  %1418 = vmatprep.subr.bf16.mxu0 %v1863_v26 }
 0x40c   :  { %1419 = vmatpush1.bf16.xpose.msra.mxu0 %v1865_v27 }
 0x412   :  { %v1867_v28 = vpop.eup %1866 }
 0x413   :  { %v1869_v29 = vpop.eup %1868  ;;  %1420 = vmatprep.subr.bf16.mxu0 %v1867_v28 }
 0x414   :  { %1421 = vmatpush1.bf16.xpose.msra.mxu0 %v1869_v29 }
 0x41b   :  { %1439 = vmatmul.mubr.bf16.vlgmr.msra.gmra.mrb[64].mxu0 %v1396_v48 }
 0x4ee   :  { %v1440_v51 = vpop.f32.mrb[64].mxu0 }
 0x4ef   :  { %1446 = vst [vmem:[#allocation8] sm:$0x1] %v1440_v51  ;;  %v1442_v53 = vpop.f32.mrb[65].mxu0 }
 0x4f0   :  { %v1443_v30 = vpop.f32.mrb[66].mxu0 }
 0x4f1   :  { %1947 = shalt.err (!%p1944_p0)
}
 0x4f2   :  { %s1948_s25 = scalar_lea.hbm %s2335_s10, 16 }
 0x4f3   :  { %p1949_p1 = scmp.ne.s32.totalorder %s2335_s10, %s1948_s25  ;;  %p1952_p2 = scmp.lt.u32.totalorder %s1948_s25, %s2335_s10 }
 0x4f5   :  { %p1954_p3 = pnand %p1952_p2, %p1949_p1 }
 0x4f7   :  { %1957 = shalt.err (!%p1954_p3)
}
 0x4f8   :  { %1456 = dma.vmem_to_hbm [thread:$0]  %s1454_s9, 16, %s2335_s10, [#allocation4]   ;;  %v1444_v2 = vpop.f32.mrb[67].mxu0 }
 0x4f9   :  { %1962 = dma.done.wait [#allocation4], 16  }
 0x4fa   :  { %1963 = vsyncadd [#allocation4], 4294967280 }
 0x4fb   :  { %1460 = vsyncpa [#allocation3], 1 }
 0x4fc   :  { %1461 = vsyncpa [#allocation6], 1 }
 0x4fd   :  { %1462 = vsyncpa [#allocation4], 1 }

</bundles_post_ra>
